<compile_context>
chip_gen: v5e
topology: v5e:2x2
jax: 0.10.0
libtpu: 0.0.40
codegen_flags: <defaults>
</compile_context>

<pallas_src>
import jax
import jax.numpy as jnp
import numpy as np
from jax import lax
from jax.experimental import pallas as pl
from jax.experimental.pallas import tpu as pltpu

_LANES = 128
_ACC_ROWS = 8                 # one (8, 128) f32 output block per parallel slice
_MAX_BLOCK_ROWS = 8192        # 4 MiB per f32 input block per grid step
_SUB_ROWS = 512               # in-kernel sub-chunk (bounds VMEM temporaries)


def _cdiv(a, b):
    return -(-a // b)


def _make_kernel(rows, block_rows, k_steps, sub_rows, need_mask):
    """Build the streaming-reduction kernel for a fixed (static) geometry."""
    full_subs = block_rows // sub_rows
    rem = block_rows - full_subs * sub_rows

    def kernel(x_ref, t_ref, acc_ref):
        k = pl.program_id(1)

        @pl.when(k == 0)
        def _():
            acc_ref[...] = jnp.zeros_like(acc_ref)

        def chunk(start, nrows, limit, carry):
            """Fold one (nrows, 128) sub-chunk into the four lane-partials."""
            x = x_ref[pl.ds(start, nrows), :].astype(jnp.float32)
            t = t_ref[pl.ds(start, nrows), :]          # native dtype compare
            pos = t == 1
            neg = t == 0
            if limit is not None:
                # Row-validity mask for ragged / overhang blocks.  Garbage in
                # the out-of-bounds rows never reaches the sums (selects, not
                # multiplies, so NaN/Inf garbage cannot leak through).
                rid = lax.broadcasted_iota(jnp.int32, (nrows, _LANES), 0) + start
                ok = rid < limit
                pos = jnp.logical_and(pos, ok)
                neg = jnp.logical_and(neg, ok)
            # Numerically stable BCE-with-logits split by class (log1p matches
            # the reference exactly):
            #   t == 0 : softplus(x)  = max(x, 0) + log1p(exp(-|x|))
            #   t == 1 : softplus(-x) = softplus(x) - x
            sp = jnp.log1p(jnp.exp(-jnp.abs(x)))       # EUP slot
            loss_neg = jnp.maximum(x, 0.0) + sp
            loss_pos = loss_neg - x
            one = jnp.float32(1.0)
            zero = jnp.float32(0.0)
            cp, cn, lp, ln = carry
            cp = cp + jnp.sum(jnp.where(pos, one, zero), axis=0, keepdims=True)
            cn = cn + jnp.sum(jnp.where(neg, one, zero), axis=0, keepdims=True)
            lp = lp + jnp.sum(jnp.where(pos, loss_pos, zero), axis=0, keepdims=True)
            ln = ln + jnp.sum(jnp.where(neg, loss_neg, zero), axis=0, keepdims=True)
            return (cp, cn, lp, ln)

        def accumulate(limit):
            z = jnp.zeros((1, _LANES), jnp.float32)
            carry = (z, z, z, z)
            if full_subs == 1:
                carry = chunk(0, sub_rows, limit, carry)
            elif full_subs > 1:
                carry = lax.fori_loop(
                    0, full_subs,
                    lambda s, c: chunk(s * sub_rows, sub_rows, limit, c),
                    carry, unroll=True)
            if rem:
                carry = chunk(full_subs * sub_rows, rem, limit, carry)
            cp, cn, lp, ln = carry
            acc_ref[pl.ds(0, 1), :] += cp
            acc_ref[pl.ds(1, 1), :] += cn
            acc_ref[pl.ds(2, 1), :] += lp
            acc_ref[pl.ds(3, 1), :] += ln

        if need_mask:
            blk = pl.program_id(0) * k_steps + k       # logical block index
            limit = rows - blk * block_rows            # valid rows this block
            is_full = limit >= block_rows

            @pl.when(is_full)
            def _():
                accumulate(None)                       # fast path, no mask ops

            @pl.when(jnp.logical_not(is_full))
            def _():
                accumulate(limit)                      # ragged / overhang path
        else:
            accumulate(None)

    return kernel


def bce2d(inputs, targets, *, max_block_rows=_MAX_BLOCK_ROWS):
    """Pallas implementation of JointEdgeSegLoss.bce2d.  Returns a scalar.

    `targets` may be float (as in the PyTorch module, values {0, 1, >1=ignore})
    or any integer dtype; passing int8/uint8 masks cuts the target HBM stream
    to 1 B/elem with no wrapper-side cast.

    Note: if the input contains no {0, 1} targets the result is NaN (0/0),
    matching the reference / PyTorch behavior.
    """
    total = int(np.prod(inputs.shape))
    x = inputs.reshape(-1)
    t = targets.reshape(-1)

    if total % _LANES != 0:
        # Rare fallback (< 128 extra elements): pad the flat views so they can
        # be reshaped to (rows, 128).  Target pad value 2 means "ignore"
        # (weight 0), so the result is unchanged.
        # TODO(synk): lift this copy with an in-kernel 1-D tail if
        # lane-unaligned element counts ever matter.
        pad = _LANES - total % _LANES
        x = jnp.pad(x, (0, pad))
        t = jnp.pad(t, (0, pad), constant_values=2)

    rows = _cdiv(total, _LANES)
    x2 = x.reshape(rows, _LANES)      # free reshape (contiguous, no copy)
    t2 = t.reshape(rows, _LANES)

    if rows <= max_block_rows:
        block_rows = rows             # block == full dim: legal for any dtype
        nblocks = 1
    else:
        block_rows = max_block_rows   # multiple of 512 -> f32/bf16/int8 tiling OK
        nblocks = _cdiv(rows, block_rows)

    # Leading "parallel" axis: on v7x the two TensorCores each stream half the
    # blocks; on 1-TC chips (v5e/v6e) it is just one more outer iteration.
    p = 2 if nblocks >= 2 else 1
    k_steps = _cdiv(nblocks, p)
    sub_rows = min(_SUB_ROWS, block_rows)
    need_mask = (nblocks * block_rows != rows) or (p * k_steps != nblocks)

    if p * k_steps == nblocks:
        def in_map(i, k):
            return (i * k_steps + k, 0)
    else:
        # Overhang step(s) re-read the last real block; the kernel's validity
        # mask zeroes their contribution, so no element is double counted.
        def in_map(i, k):
            return (jnp.minimum(i * k_steps + k, nblocks - 1), 0)

    kernel = _make_kernel(rows, block_rows, k_steps, sub_rows, need_mask)

    acc = pl.pallas_call(
        kernel,
        out_shape=jax.ShapeDtypeStruct((p * _ACC_ROWS, _LANES), jnp.float32),
        grid_spec=pltpu.PrefetchScalarGridSpec(
            num_scalar_prefetch=0,
            grid=(p, k_steps),
            in_specs=[
                pl.BlockSpec((block_rows, _LANES), in_map),
                pl.BlockSpec((block_rows, _LANES), in_map),
            ],
            out_specs=pl.BlockSpec((_ACC_ROWS, _LANES), lambda i, k: (i, 0)),
        ),
        compiler_params=pltpu.CompilerParams(
            dimension_semantics=("parallel", "arbitrary"),
            vmem_limit_bytes=32 * 1024 * 1024,
        ),
    )(x2, t2)

    # Tiny epilogue (few KiB): cross-lane reduce of the lane-partials plus the
    # scalar class-balanced combine.
    part = jnp.sum(acc.reshape(p, _ACC_ROWS, _LANES), axis=(0, 2))
    pos_num, neg_num = part[0], part[1]
    s_pos, s_neg = part[2], part[3]
    sum_num = pos_num + neg_num
    weighted = (neg_num / sum_num) * s_pos + (pos_num / sum_num) * s_neg
    return weighted / jnp.float32(total)      # size_average=True -> / numel


def joint_edge_seg_loss(inputs, targets, *, edge_weight=1.0,
                        max_block_rows=_MAX_BLOCK_ROWS):
    """JointEdgeSegLoss.forward: edge_weight * bce2d(inputs, targets)."""
    return edge_weight * bce2d(inputs, targets, max_block_rows=max_block_rows)


def joint_edge_seg_loss_ref(inputs, targets, *, edge_weight=1.0):
    """Plain-JAX reference mirroring the PyTorch module."""
    x = inputs.astype(jnp.float32).reshape(-1)
    t = targets.astype(jnp.float32).reshape(-1)
    pos = t == 1.0
    neg = t == 0.0
    pos_num = jnp.sum(pos.astype(jnp.float32))
    neg_num = jnp.sum(neg.astype(jnp.float32))
    sum_num = pos_num + neg_num
    weight = jnp.where(pos, neg_num / sum_num,
                       jnp.where(neg, pos_num / sum_num, 0.0))
    bce = jnp.maximum(x, 0.0) - x * t + jnp.log1p(jnp.exp(-jnp.abs(x)))
    return edge_weight * jnp.mean(weight * bce)


def _check(loss, inputs, targets_f32, edge_weight=1.0):
    ref = joint_edge_seg_loss_ref(inputs, targets_f32, edge_weight=edge_weight)
    np.testing.assert_allclose(np.asarray(loss), np.asarray(ref),
                               rtol=5e-5, atol=1e-6)


if __name__ == "__main__":
    key = jax.random.PRNGKey(0)
    k1, k2, k3, k4, k5, k6, k7, k8 = jax.random.split(key, 8)

    # 1) Module-shaped case: (N, C, H, W) = (2, 4, 16, 16), float targets with
    #    {0, 1} plus some 255 "ignore" pixels (as in the original pipeline).
    N, C, H, W = 2, 4, 16, 16
    logits = jax.random.normal(k1, (N, C, H, W), dtype=jnp.float32)
    tgt = (jax.random.uniform(k2, (N, C, H, W)) > 0.7).astype(jnp.float32)
    tgt = jnp.where(jax.random.uniform(k3, (N, C, H, W)) < 0.1,
                    jnp.float32(255.0), tgt)
    loss = jax.block_until_ready(joint_edge_seg_loss(logits, tgt, edge_weight=1.0))
    _check(loss, logits, tgt, edge_weight=1.0)

    # 2) Multi-block path with a ragged last block and a p=2 overhang step
    #    (tiny block size forced only to exercise the masked code path).
    logits2 = jax.random.normal(k4, (2, 5, 16, 16), dtype=jnp.float32)
    tgt2 = (jax.random.uniform(k5, (2, 5, 16, 16)) > 0.5).astype(jnp.float32)
    loss2 = jax.block_until_ready(
        joint_edge_seg_loss(logits2, tgt2, edge_weight=0.7, max_block_rows=8))
    _check(loss2, logits2, tgt2, edge_weight=0.7)

    # 3) uint8 targets (1 B/elem HBM stream, no wrapper cast) on a shape whose
    #    block uses the in-kernel sub-chunk loop plus a tail chunk.
    logits3 = jax.random.normal(k6, (2, 4, 130, 128), dtype=jnp.float32)
    tgt3_u8 = (jax.random.uniform(k7, (2, 4, 130, 128)) > 0.6).astype(jnp.uint8)
    tgt3_u8 = jnp.where(jax.random.uniform(k8, (2, 4, 130, 128)) < 0.05,
                        jnp.uint8(2), tgt3_u8)        # 2 -> ignore
    loss3 = jax.block_until_ready(joint_edge_seg_loss(logits3, tgt3_u8))
    _check(loss3, logits3, tgt3_u8.astype(jnp.float32), edge_weight=1.0)

    print("KERNEL_OK")
</pallas_src>

<mosaic_0001>
module attributes {stable_mosaic.version = 11 : i64} {
  func.func @kernel(%arg0: i32, %arg1: i32, %arg2: memref<16x128xf32, #tpu.memory_space<vmem>>, %arg3: memref<16x128xf32, #tpu.memory_space<vmem>>, %arg4: memref<8x128xf32, #tpu.memory_space<vmem>>) attributes {dimension_semantics = [#tpu.dimension_semantics<parallel>, #tpu.dimension_semantics<arbitrary>], iteration_bounds = array<i64: 1, 1>, scalar_prefetch = 0 : i64, scratch_operands = 0 : i64, tpu.core_type = #tpu.core_type<tc>, window_params = [{transform_indices = @transform_0, window_bounds = array<i64: 16, 128>}, {transform_indices = @transform_1, window_bounds = array<i64: 16, 128>}, {transform_indices = @transform_2, window_bounds = array<i64: 8, 128>}]} {
    %c0_i32 = arith.constant 0 : i32
    %0 = arith.cmpi eq, %arg1, %c0_i32 : i32
    %1 = arith.extui %0 : i1 to i32
    %c0_i32_0 = arith.constant 0 : i32
    %2 = arith.cmpi ne, %1, %c0_i32_0 : i32
    scf.if %2 {
      %cst_31 = arith.constant 0.000000e+00 : f32
      %53 = vector.broadcast %cst_31 : f32 to vector<8x128xf32>
      %c0_32 = arith.constant 0 : index
      %c0_33 = arith.constant 0 : index
      %54 = vector.load %arg4[%c0_32, %c0_33] : memref<8x128xf32, #tpu.memory_space<vmem>>, vector<8x128xf32>
      tpu.vector_store %arg4[%c0_32, %c0_33], %53 {strides = array<i32>} : memref<8x128xf32, #tpu.memory_space<vmem>>, vector<8x128xf32>,
    } else {
    }
    %cst = arith.constant 0.000000e+00 : f32
    %3 = vector.broadcast %cst : f32 to vector<1x128xf32>
    %c0 = arith.constant 0 : index
    %c0_1 = arith.constant 0 : index
    %4 = vector.load %arg2[%c0, %c0_1] : memref<16x128xf32, #tpu.memory_space<vmem>>, vector<16x128xf32>
    %c0_2 = arith.constant 0 : index
    %c0_3 = arith.constant 0 : index
    %5 = vector.load %arg3[%c0_2, %c0_3] : memref<16x128xf32, #tpu.memory_space<vmem>>, vector<16x128xf32>
    %cst_4 = arith.constant 1.000000e+00 : f32
    %6 = vector.broadcast %cst_4 : f32 to vector<16x128xf32>
    %7 = arith.cmpf oeq, %5, %6 : vector<16x128xf32>
    %cst_5 = arith.constant 0.000000e+00 : f32
    %8 = vector.broadcast %cst_5 : f32 to vector<16x128xf32>
    %9 = arith.cmpf oeq, %5, %8 : vector<16x128xf32>
    %10 = math.absf %4 : vector<16x128xf32>
    %cst_6 = arith.constant 0.000000e+00 : f32
    %11 = vector.broadcast %cst_6 : f32 to vector<16x128xf32>
    %12 = arith.subf %11, %10 : vector<16x128xf32>
    %13 = math.exp %12 : vector<16x128xf32>
    %14 = math.log1p %13 : vector<16x128xf32>
    %cst_7 = arith.constant 0.000000e+00 : f32
    %15 = vector.broadcast %cst_7 : f32 to vector<16x128xf32>
    %16 = arith.maximumf %4, %15 : vector<16x128xf32>
    %17 = arith.addf %16, %14 : vector<16x128xf32>
    %18 = arith.subf %17, %4 : vector<16x128xf32>
    %cst_8 = arith.constant 1.000000e+00 : f32
    %cst_9 = arith.constant 0.000000e+00 : f32
    %19 = vector.broadcast %cst_8 : f32 to vector<16x128xf32>
    %20 = vector.broadcast %cst_9 : f32 to vector<16x128xf32>
    %21 = arith.select %7, %19, %20 : vector<16x128xi1>, vector<16x128xf32>
    %cst_10 = arith.constant dense<0.000000e+00> : vector<128xf32>
    %22 = vector.multi_reduction <add>, %21, %cst_10 [0] : vector<16x128xf32> to vector<128xf32>
    %23 = vector.shape_cast %22 : vector<128xf32> to vector<1x128xf32>
    %24 = arith.addf %3, %23 : vector<1x128xf32>
    %cst_11 = arith.constant 1.000000e+00 : f32
    %cst_12 = arith.constant 0.000000e+00 : f32
    %25 = vector.broadcast %cst_11 : f32 to vector<16x128xf32>
    %26 = vector.broadcast %cst_12 : f32 to vector<16x128xf32>
    %27 = arith.select %9, %25, %26 : vector<16x128xi1>, vector<16x128xf32>
    %cst_13 = arith.constant dense<0.000000e+00> : vector<128xf32>
    %28 = vector.multi_reduction <add>, %27, %cst_13 [0] : vector<16x128xf32> to vector<128xf32>
    %29 = vector.shape_cast %28 : vector<128xf32> to vector<1x128xf32>
    %30 = arith.addf %3, %29 : vector<1x128xf32>
    %cst_14 = arith.constant 0.000000e+00 : f32
    %31 = vector.broadcast %cst_14 : f32 to vector<16x128xf32>
    %32 = arith.select %7, %18, %31 : vector<16x128xi1>, vector<16x128xf32>
    %cst_15 = arith.constant dense<0.000000e+00> : vector<128xf32>
    %33 = vector.multi_reduction <add>, %32, %cst_15 [0] : vector<16x128xf32> to vector<128xf32>
    %34 = vector.shape_cast %33 : vector<128xf32> to vector<1x128xf32>
    %35 = arith.addf %3, %34 : vector<1x128xf32>
    %cst_16 = arith.constant 0.000000e+00 : f32
    %36 = vector.broadcast %cst_16 : f32 to vector<16x128xf32>
    %37 = arith.select %9, %17, %36 : vector<16x128xi1>, vector<16x128xf32>
    %cst_17 = arith.constant dense<0.000000e+00> : vector<128xf32>
    %38 = vector.multi_reduction <add>, %37, %cst_17 [0] : vector<16x128xf32> to vector<128xf32>
    %39 = vector.shape_cast %38 : vector<128xf32> to vector<1x128xf32>
    %40 = arith.addf %3, %39 : vector<1x128xf32>
    %c0_18 = arith.constant 0 : index
    %c0_19 = arith.constant 0 : index
    %41 = vector.load %arg4[%c0_18, %c0_19] : memref<8x128xf32, #tpu.memory_space<vmem>>, vector<1x128xf32>
    %42 = arith.addf %41, %24 : vector<1x128xf32>
    %c0_20 = arith.constant 0 : index
    %c0_21 = arith.constant 0 : index
    %43 = vector.load %arg4[%c0_20, %c0_21] : memref<8x128xf32, #tpu.memory_space<vmem>>, vector<1x128xf32>
    tpu.vector_store %arg4[%c0_20, %c0_21], %42 {strides = array<i32>} : memref<8x128xf32, #tpu.memory_space<vmem>>, vector<1x128xf32>,
    %c1 = arith.constant 1 : index
    %c0_22 = arith.constant 0 : index
    %44 = vector.load %arg4[%c1, %c0_22] : memref<8x128xf32, #tpu.memory_space<vmem>>, vector<1x128xf32>
    %45 = arith.addf %44, %30 : vector<1x128xf32>
    %c1_23 = arith.constant 1 : index
    %c0_24 = arith.constant 0 : index
    %46 = vector.load %arg4[%c1_23, %c0_24] : memref<8x128xf32, #tpu.memory_space<vmem>>, vector<1x128xf32>
    tpu.vector_store %arg4[%c1_23, %c0_24], %45 {strides = array<i32>} : memref<8x128xf32, #tpu.memory_space<vmem>>, vector<1x128xf32>,
    %c2 = arith.constant 2 : index
    %c0_25 = arith.constant 0 : index
    %47 = vector.load %arg4[%c2, %c0_25] : memref<8x128xf32, #tpu.memory_space<vmem>>, vector<1x128xf32>
    %48 = arith.addf %47, %35 : vector<1x128xf32>
    %c2_26 = arith.constant 2 : index
    %c0_27 = arith.constant 0 : index
    %49 = vector.load %arg4[%c2_26, %c0_27] : memref<8x128xf32, #tpu.memory_space<vmem>>, vector<1x128xf32>
    tpu.vector_store %arg4[%c2_26, %c0_27], %48 {strides = array<i32>} : memref<8x128xf32, #tpu.memory_space<vmem>>, vector<1x128xf32>,
    %c3 = arith.constant 3 : index
    %c0_28 = arith.constant 0 : index
    %50 = vector.load %arg4[%c3, %c0_28] : memref<8x128xf32, #tpu.memory_space<vmem>>, vector<1x128xf32>
    %51 = arith.addf %50, %40 : vector<1x128xf32>
    %c3_29 = arith.constant 3 : index
    %c0_30 = arith.constant 0 : index
    %52 = vector.load %arg4[%c3_29, %c0_30] : memref<8x128xf32, #tpu.memory_space<vmem>>, vector<1x128xf32>
    tpu.vector_store %arg4[%c3_29, %c0_30], %51 {strides = array<i32>} : memref<8x128xf32, #tpu.memory_space<vmem>>, vector<1x128xf32>,
    return
  }
  func.func @transform_0(%arg0: i32, %arg1: i32) -> (i32, i32) {
    %c1_i32 = arith.constant 1 : i32
    %0 = arith.muli %arg0, %c1_i32 : i32
    %1 = arith.addi %0, %arg1 : i32
    %c0_i32 = arith.constant 0 : i32
    %c0_i32_0 = arith.constant 0 : i32
    return %1, %c0_i32 : i32, i32
  }
  func.func @transform_1(%arg0: i32, %arg1: i32) -> (i32, i32) {
    %c1_i32 = arith.constant 1 : i32
    %0 = arith.muli %arg0, %c1_i32 : i32
    %1 = arith.addi %0, %arg1 : i32
    %c0_i32 = arith.constant 0 : i32
    %c0_i32_0 = arith.constant 0 : i32
    return %1, %c0_i32 : i32, i32
  }
  func.func @transform_2(%arg0: i32, %arg1: i32) -> (i32, i32) {
    %c0_i32 = arith.constant 0 : i32
    %c0_i32_0 = arith.constant 0 : i32
    return %arg0, %c0_i32 : i32, i32
  }
}

</mosaic_0001>

<bundles_post_ra>
// kernel: tpu_custom_call.1
= control target key start
LH: loop header
LB: loop body
LE: loop exit
PB: predicated region body
PF: predicated region fallthrough
CT: control target
= control target key end

     0   :  { %7 = vsyncpa [#allocation3], 0  ;;  %s322_s0 = inlined_call_operand.hbm [shape: f32[16,128], index: 0, kind: input, shape index: {}]   ;;  %s323_s1 = inlined_call_operand.hbm [shape: f32[16,128], index: 1, kind: input, shape index: {}]   ;;  %s324_s2 = inlined_call_operand.hbm [shape: f32[8,128], index: 2, kind: output, shape index: {}]  }
   0x1   :  { %8 = vsyncpa [#allocation6], 0 }
   0x2   :  { %9 = vsyncpa [#allocation4], 0  ;;  %s18_s11 = sshll.u32 %s322_s0, 4  ;;  %s263_s12 = smov [#allocation2]   ;;  %s19_s11 = int_to_ptr.hbm [resolvable:$true] %s18_s11 }
   0x3   :  { %s20_s13 = sshll.u32 %s263_s12, 4  ;;  %s35_s16 = sshll.u32 %s323_s1, 4  ;;  %s21_s13 = int_to_ptr.vmem [resolvable:$true] %s20_s13  ;;  %s36_s16 = int_to_ptr.hbm [resolvable:$true] %s35_s16 }
   0x4   :  { %s264_s17 = smov 128   ;;  %s265_s18 = smov 8  }
   0x5   :  { %26 = dma.hbm_to_vmem [thread:$0]  %s19_s11, 256, %s21_s13, [#allocation3], %s264_s17, %s264_s17, %s265_s18  }
   0x6   :  { %s266_s19 = smov [#allocation5]  }
   0x7   :  { %s37_s20 = sshll.u32 %s266_s19, 4  ;;  %s38_s20 = int_to_ptr.vmem [resolvable:$true] %s37_s20 }
   0x8   :  { %43 = dma.hbm_to_vmem [thread:$0]  %s36_s16, 256, %s38_s20, [#allocation6], %s264_s17, %s264_s17, %s265_s18  }
   0x9   :  { %257 = dma.done.wait [#allocation3], 256  }
   0xa   :  { %258 = vsyncadd [#allocation3], 4294967040 }
   0xb   :  { %259 = dma.done.wait [#allocation6], 256  }
   0xc   :  { %260 = vsyncadd [#allocation6], 4294967040  ;;  %v267_v0 = vmov 0.0   ;;  %v290_v1 = vld [vmem:[#allocation5] sm:$0xff]  ;;  %v292_v2 = vld [vmem:[#allocation5 + $0x8] sm:$0xff]  ;;  %s268_s0 = smov [#allocation7]  }
   0xd   :  { %60 = vst [vmem:[#allocation7] sm:$0xff] %v267_v0  ;;  %v294_v3 = vld [vmem:[#allocation2] sm:$0xff]  ;;  %vm65_vm0 = vcmp.eq.f32.partialorder %v290_v1, 1.0  ;;  %vm66_vm1 = vcmp.eq.f32.partialorder %v292_v2, 1.0  ;;  %vm67_vm2 = vcmp.eq.f32.partialorder %v290_v1, 0.0  ;;  %vm68_vm3 = vcmp.eq.f32.partialorder %v292_v2, 0.0 }
   0xe   :  { %v101_v4 = vsel %vm65_vm0, 1.0, %v267_v0  ;;  %v102_v5 = vsel %vm66_vm1, 1.0, %v267_v0  ;;  %v111_v6 = vsel %vm67_vm2, 1.0, %v267_v0  ;;  %v112_v7 = vsel %vm68_vm3, 1.0, %v267_v0  ;;  %v62_v10 = vld [vmem:[#allocation2 + $0x8] sm:$0xff]  ;;  %s158_s1 = sshll.u32 %s268_s0, 4  ;;  %s159_s1 = int_to_ptr.vmem [resolvable:$true] %s158_s1 }
   0xf   :  { %v103_v8 = vadd.f32 %v102_v5, %v101_v4  ;;  %v113_v9 = vadd.f32 %v112_v7, %v111_v6  ;;  %v69_v11 = vand.u32 2147483647, %v294_v3  ;;  %v70_v12 = vand.u32 2147483647, %v62_v10  ;;  %s160_s23 = sshll.u32 %s324_s2, 4  ;;  %s161_s23 = int_to_ptr.hbm [resolvable:$true] %s160_s23 }
  0x10   :  { %v95_v46 = vmax.f32 %v294_v3, 0.0  ;;  %v96_v49 = vmax.f32 %v62_v10, 0.0 }
  0x11   :  { %v104_v13 = vrot.slane %v103_v8, 4  ;;  %v114_v14 = vrot.slane %v113_v9, 4  ;;  %v71_v15 = vsub.f32 0.0, %v69_v11  ;;  %v72_v16 = vsub.f32 0.0, %v70_v12 }
  0x13   :  { %v105_v17 = vadd.f32 %v104_v13, %v103_v8  ;;  %v115_v18 = vadd.f32 %v114_v14, %v113_v9  ;;  %v73_v19 = vmul.f32 1.442695, %v71_v15  ;;  %v75_v20 = vmul.f32 1.442695, %v72_v16 }
  0x14   :  { %v141_v27 = vld [vmem:[#allocation7] sm:$0x1]  ;;  %v144_v28 = vld [vmem:[#allocation7 + $0x1] sm:$0x1]  ;;  %v147_v13 = vld [vmem:[#allocation7 + $0x2] sm:$0x1] }
  0x15   :  { %v106_v21 = vrot.slane %v105_v17, 2  ;;  %v116_v22 = vrot.slane %v115_v18, 2  ;;  %177 = vpow2.f32 %v73_v19 }
  0x16   :  { %179 = vpow2.f32 %v75_v20 }
  0x17   :  { %v107_v23 = vadd.f32 %v106_v21, %v105_v17  ;;  %v117_v24 = vadd.f32 %v116_v22, %v115_v18 }
  0x19   :  { %v108_v25 = vrot.slane %v107_v23, 1  ;;  %v118_v26 = vrot.slane %v117_v24, 1 }
  0x1b   :  { %v178_v29 = vpop.eup %177  ;;  %v109_v30 = vadd.f32 %v108_v25, %v107_v23  ;;  %v119_v31 = vadd.f32 %v118_v26, %v117_v24 }
  0x1c   :  { %v180_v32 = vpop.eup %179  ;;  %v77_v33 = vadd.f32 1.0, %v178_v29  ;;  %v80_v34 = vmul.f32 -0.5, %v178_v29  ;;  %v83_v40 = vand.u32 2147483647, %v178_v29 }
  0x1d   :  { %v142_v35 = vadd.f32 %v141_v27, %v109_v30  ;;  %v145_v36 = vadd.f32 %v144_v28, %v119_v31  ;;  %v86_v37 = vadd.f32 1.0, %v180_v32  ;;  %v89_v38 = vmul.f32 -0.5, %v180_v32 }
  0x1e   :  { %181 = vlog2.f32 %v77_v33  ;;  %v81_v39 = vadd.f32 1.0, %v80_v34  ;;  %v92_v42 = vand.u32 2147483647, %v180_v32  ;;  %vm84_vm4 = vcmp.lt.f32.partialorder %v83_v40, 0.0004427343 }
  0x1f   :  { %143 = vst [vmem:[#allocation7] sm:$0x1] %v142_v35  ;;  %183 = vlog2.f32 %v86_v37  ;;  %v90_v41 = vadd.f32 1.0, %v89_v38 }
  0x20   :  { %146 = vst [vmem:[#allocation7 + $0x1] sm:$0x1] %v145_v36  ;;  %v82_v43 = vmul.f32 %v178_v29, %v81_v39  ;;  %vm93_vm5 = vcmp.lt.f32.partialorder %v92_v42, 0.0004427343 }
  0x21   :  { %v91_v45 = vmul.f32 %v180_v32, %v90_v41 }
  0x24   :  { %v182_v44 = vpop.eup %181 }
  0x25   :  { %v184_v47 = vpop.eup %183  ;;  %v79_v48 = vmul.f32 0.6931472, %v182_v44 }
  0x26   :  { %v88_v50 = vmul.f32 0.6931472, %v184_v47 }
  0x27   :  { %v85_v51 = vsel %vm84_vm4, %v82_v43, %v79_v48 }
  0x28   :  { %v94_v52 = vsel %vm93_vm5, %v91_v45, %v88_v50  ;;  %v97_v53 = vadd.f32 %v95_v46, %v85_v51 }
  0x29   :  { %v98_v54 = vadd.f32 %v96_v49, %v94_v52 }
  0x2a   :  { %v99_v55 = vsub.f32 %v97_v53, %v294_v3  ;;  %v131_v56 = vsel %vm67_vm2, %v97_v53, 0.0 }
  0x2b   :  { %v100_v57 = vsub.f32 %v98_v54, %v62_v10  ;;  %v132_v58 = vsel %vm68_vm3, %v98_v54, 0.0  ;;  %v150_v10 = vld [vmem:[#allocation7 + $0x3] sm:$0x1] }
  0x2c   :  { %v121_v59 = vsel %vm65_vm0, %v99_v55, 0.0  ;;  %v133_v60 = vadd.f32 %v132_v58, %v131_v56 }
  0x2d   :  { %v122_v61 = vsel %vm66_vm1, %v100_v57, 0.0 }
  0x2e   :  { %v123_v62 = vadd.f32 %v122_v61, %v121_v59  ;;  %v134_v63 = vrot.slane %v133_v60, 4 }
  0x30   :  { %v124_v0 = vrot.slane %v123_v62, 4  ;;  %v135_v4 = vadd.f32 %v134_v63, %v133_v60 }
  0x32   :  { %v125_v5 = vadd.f32 %v124_v0, %v123_v62  ;;  %v136_v3 = vrot.slane %v135_v4, 2 }
  0x34   :  { %v126_v6 = vrot.slane %v125_v5, 2  ;;  %v137_v7 = vadd.f32 %v136_v3, %v135_v4 }
  0x36   :  { %v127_v8 = vadd.f32 %v126_v6, %v125_v5  ;;  %v138_v9 = vrot.slane %v137_v7, 1 }
  0x38   :  { %v128_v11 = vrot.slane %v127_v8, 1  ;;  %v139_v12 = vadd.f32 %v138_v9, %v137_v7 }
  0x3a   :  { %v129_v1 = vadd.f32 %v128_v11, %v127_v8  ;;  %v151_v2 = vadd.f32 %v150_v10, %v139_v12 }
  0x3c   :  { %v148_v14 = vadd.f32 %v147_v13, %v129_v1  ;;  %152 = vst [vmem:[#allocation7 + $0x3] sm:$0x1] %v151_v2 }
  0x3e   :  { %149 = vst [vmem:[#allocation7 + $0x2] sm:$0x1] %v148_v14 }
  0x3f   :  { %163 = dma.vmem_to_hbm [thread:$0]  %s159_s1, 128, %s161_s23, [#allocation4]  }
  0x40   :  { %261 = dma.done.wait [#allocation4], 128  }
  0x41   :  { %262 = vsyncadd [#allocation4], 4294967168 }
  0x42   :  { %168 = vsyncpa [#allocation3], 1 }
  0x43   :  { %169 = vsyncpa [#allocation6], 1 }
  0x44   :  { %170 = vsyncpa [#allocation4], 1 }

</bundles_post_ra>
